<compile_context>
chip_gen: v6e
topology: v6e:2x2x1
jax: 0.10.0
libtpu: 0.0.40
codegen_flags: <defaults>
</compile_context>

<pallas_src>
import functools

import jax
import jax.numpy as jnp
from jax import lax
from jax.experimental import pallas as pl
from jax.experimental.pallas import tpu as pltpu

MARGIN = 1.0


def _row_dot(a, b):
    """(T, D), (T, D) -> (T, 1) row-wise dot product (lane reduce)."""
    return jnp.sum(a * b, axis=1, keepdims=True)


def _prl_kernel(im_i_ref, s_j_ref, im_j_ref, s_i_ref, out_ref,
                im_i_n_ref, diag_i_ref, diag_col_ref, *,
                n_total, margin, mm_dtype):
    i = pl.program_id(0)
    j = pl.program_id(1)
    is_first = jnp.logical_and(i == 0, j == 0)
    is_last = jnp.logical_and(i == pl.num_programs(0) - 1,
                              j == pl.num_programs(1) - 1)

    @pl.when(is_first)
    def _init():
        out_ref[0, 0] = jnp.float32(0.0)

    # The s column-tile changes every grid step: normalize it here
    # (rsqrt on the EUP, multiply on the VPU).
    s_j = s_j_ref[...].astype(jnp.float32)                  # (TN, D)
    s_j_n = s_j * lax.rsqrt(_row_dot(s_j, s_j))             # (TN, D)

    # The im row-tile only changes when the outer index changes: normalize it
    # once per row-tile, cache it (in the matmul dtype) together with the
    # (TM, 1) column of diagonal scores for its rows.
    @pl.when(j == 0)
    def _cache_row():
        im_i = im_i_ref[...].astype(jnp.float32)            # (TM, D)
        im_i_n = im_i * lax.rsqrt(_row_dot(im_i, im_i))     # (TM, D)
        im_i_n_ref[...] = im_i_n.astype(mm_dtype)
        s_i = s_i_ref[...].astype(jnp.float32)              # (TM, D)
        diag_i_ref[...] = _row_dot(im_i_n, s_i) * lax.rsqrt(_row_dot(s_i, s_i))

    # During the first row sweep (i == 0) every column tile is visited exactly
    # once: build its (1, TN) diagonal row and cache it so later row-tiles
    # neither reload the im column block nor recompute the diagonal.
    @pl.when(i == 0)
    def _cache_col_diag():
        im_j = im_j_ref[...].astype(jnp.float32)            # (TN, D)
        im_j_n = im_j * lax.rsqrt(_row_dot(im_j, im_j))
        p_j = im_j_n * s_j_n                                # (TN, D)
        # Skinny ones(1, D) matmul -> (1, TN) row vector, no sublane->lane
        # relayout required.
        diag_col_ref[j] = lax.dot_general(
            jnp.ones((1, p_j.shape[1]), jnp.float32), p_j,
            dimension_numbers=(((1,), (1,)), ((), ())),
            preferred_element_type=jnp.float32)

    # Score tile on the MXU: contract the feature dim of BOTH operands.
    scores = lax.dot_general(
        im_i_n_ref[...], s_j_n.astype(mm_dtype),
        dimension_numbers=(((1,), (1,)), ((), ())),
        preferred_element_type=jnp.float32)                 # (TM, TN)

    # Hinge costs (the true diagonal is removed algebraically at finalize).
    base = scores + jnp.float32(margin)
    cost_s = jnp.maximum(0.0, base - diag_col_ref[j])       # diag[col], (1, TN)
    cost_im = jnp.maximum(0.0, base - diag_i_ref[...])      # diag[row], (TM, 1)
    out_ref[0, 0] = out_ref[0, 0] + jnp.sum(cost_s + cost_im)

    @pl.when(is_last)
    def _finalize():
        # Each diagonal entry of cost_s / cost_im equals max(0, margin), since
        # margin - diag[k] + scores[k, k] == margin.  Remove those 2*N entries
        # and apply the 1/N normalization.
        diag_fix = jnp.float32(2.0 * n_total * max(float(margin), 0.0))
        out_ref[0, 0] = (out_ref[0, 0] - diag_fix) / jnp.float32(n_total)


def _pick_tile(n: int, d: int, itemsize: int) -> int:
    """Largest MXU-friendly tile dividing n whose operand blocks fit VMEM."""
    budget = 24 * 1024 * 1024          # double-buffered inputs + scratch headroom
    divisors = [t for t in (512, 256, 128, 64, 32, 16, 8) if n % t == 0]
    for t in divisors:
        if 10 * t * d * itemsize <= budget:
            return t
    if divisors:
        return divisors[-1]
    return n                            # single full tile (always a legal block)


def pairwise_ranking_loss(im, s, margin=MARGIN, tile=None):
    """im: [N, D], s: [N, D] -> scalar pairwise ranking loss (float32)."""
    assert im.ndim == 2 and im.shape == s.shape
    n, d = im.shape
    if tile is None:
        tile = _pick_tile(n, d, jnp.dtype(im.dtype).itemsize)
    assert n % tile == 0
    nt = n // tile

    # bf16 inputs keep bf16 MXU operands (f32 accumulate); everything else f32.
    mm_dtype = jnp.bfloat16 if im.dtype == jnp.bfloat16 else jnp.float32

    kernel = functools.partial(_prl_kernel, n_total=n, margin=float(margin),
                               mm_dtype=mm_dtype)

    out = pl.pallas_call(
        kernel,
        out_shape=jax.ShapeDtypeStruct((1, 1), jnp.float32),
        grid=(nt, nt),
        in_specs=[
            pl.BlockSpec((tile, d), lambda i, j: (i, 0)),   # im rows, row-tile
            pl.BlockSpec((tile, d), lambda i, j: (j, 0)),   # s  rows, col-tile
            # im rows of the col-tile are only consumed while i == 0 (to build
            # the cached diagonal); pin the block index afterwards so the
            # pipeline stops re-fetching it.
            pl.BlockSpec((tile, d),
                         lambda i, j: (jnp.where(i == 0, j, 0), 0)),
            pl.BlockSpec((tile, d), lambda i, j: (i, 0)),   # s  rows, row-tile
        ],
        out_specs=pl.BlockSpec((1, 1), lambda i, j: (0, 0),
                               memory_space=pltpu.SMEM),
        scratch_shapes=[
            pltpu.VMEM((tile, d), mm_dtype),         # cached normalized im row-tile
            pltpu.VMEM((tile, 1), jnp.float32),      # cached diag for row-tile rows
            pltpu.VMEM((nt, 1, tile), jnp.float32),  # cached diag rows, all col-tiles
        ],
        compiler_params=pltpu.CompilerParams(
            # Both grid axes revisit the single scalar output block (it is a
            # reduction accumulator), so they must stay "arbitrary".
            dimension_semantics=("arbitrary", "arbitrary")),
    )(im, s, im, s)
    return out[0, 0]


def _reference(im, s, margin=MARGIN):
    im = im / jnp.linalg.norm(im, axis=1, keepdims=True)
    s = s / jnp.linalg.norm(s, axis=1, keepdims=True)
    scores = im @ s.T
    diag = jnp.diag(scores)
    cost_s = jnp.maximum(0.0, (margin - diag)[None, :] + scores)
    cost_im = jnp.maximum(0.0, (margin - diag)[:, None] + scores)
    mask = 1.0 - jnp.eye(scores.shape[0], dtype=scores.dtype)
    return (jnp.sum(cost_s * mask) + jnp.sum(cost_im * mask)) / im.shape[0]


if __name__ == "__main__":
    key = jax.random.PRNGKey(0)

    # Case 1: small default path (single tile).
    N, D = 8, 32
    k_im, k_s, k_im2, k_s2 = jax.random.split(key, 4)
    im = jax.random.normal(k_im, (N, D), dtype=jnp.float32)
    s = jax.random.normal(k_s, (N, D), dtype=jnp.float32)
    loss = jax.block_until_ready(pairwise_ranking_loss(im, s))
    ref = jax.block_until_ready(_reference(im, s))
    assert jnp.allclose(loss, ref, rtol=1e-5, atol=1e-4), (loss, ref)

    # Case 2: multi-tile grid (exercises the caching / pinned-index paths).
    N2, D2, T2 = 16, 32, 8
    im2 = jax.random.normal(k_im2, (N2, D2), dtype=jnp.float32)
    s2 = jax.random.normal(k_s2, (N2, D2), dtype=jnp.float32)
    loss2 = jax.block_until_ready(pairwise_ranking_loss(im2, s2, tile=T2))
    ref2 = jax.block_until_ready(_reference(im2, s2))
    assert jnp.allclose(loss2, ref2, rtol=1e-5, atol=1e-4), (loss2, ref2)

    print("KERNEL_OK")
</pallas_src>

<mosaic_0001>
module attributes {stable_mosaic.version = 11 : i64} {
  func.func @_prl_kernel(%arg0: i32, %arg1: i32, %arg2: memref<8x32xf32, #tpu.memory_space<vmem>>, %arg3: memref<8x32xf32, #tpu.memory_space<vmem>>, %arg4: memref<8x32xf32, #tpu.memory_space<vmem>>, %arg5: memref<8x32xf32, #tpu.memory_space<vmem>>, %arg6: memref<1x1xf32, #tpu.memory_space<smem>>, %arg7: memref<8x32xf32, #tpu.memory_space<vmem>>, %arg8: memref<8x1xf32, #tpu.memory_space<vmem>>, %arg9: memref<1x1x8xf32, #tpu.memory_space<vmem>>) attributes {dimension_semantics = [#tpu.dimension_semantics<arbitrary>, #tpu.dimension_semantics<arbitrary>], iteration_bounds = array<i64: 1, 1>, scalar_prefetch = 0 : i64, scratch_operands = 3 : i64, tpu.core_type = #tpu.core_type<tc>, window_params = [{transform_indices = @transform_0, window_bounds = array<i64: 8, 32>}, {transform_indices = @transform_1, window_bounds = array<i64: 8, 32>}, {transform_indices = @transform_2, window_bounds = array<i64: 8, 32>}, {transform_indices = @transform_3, window_bounds = array<i64: 8, 32>}, {transform_indices = @transform_4, window_bounds = array<i64: 1, 1>}]} {
    %c0_i32 = arith.constant 0 : i32
    %0 = arith.cmpi eq, %arg0, %c0_i32 : i32
    %c0_i32_0 = arith.constant 0 : i32
    %1 = arith.cmpi eq, %arg1, %c0_i32_0 : i32
    %2 = arith.andi %0, %1 : i1
    %c0_i32_1 = arith.constant 0 : i32
    %3 = arith.cmpi eq, %arg0, %c0_i32_1 : i32
    %c0_i32_2 = arith.constant 0 : i32
    %4 = arith.cmpi eq, %arg1, %c0_i32_2 : i32
    %5 = arith.andi %3, %4 : i1
    %6 = arith.extui %2 : i1 to i32
    %c0_i32_3 = arith.constant 0 : i32
    %7 = arith.cmpi ne, %6, %c0_i32_3 : i32
    scf.if %7 {
      %cst_25 = arith.constant 0.000000e+00 : f32
      %c0_26 = arith.constant 0 : index
      %c0_27 = arith.constant 0 : index
      %47 = memref.load %arg6[%c0_26, %c0_27] : memref<1x1xf32, #tpu.memory_space<smem>>
      memref.store %cst_25, %arg6[%c0_26, %c0_27] : memref<1x1xf32, #tpu.memory_space<smem>>
    } else {
    }
    %c0 = arith.constant 0 : index
    %c0_4 = arith.constant 0 : index
    %8 = vector.load %arg3[%c0, %c0_4] : memref<8x32xf32, #tpu.memory_space<vmem>>, vector<8x32xf32>
    %9 = arith.mulf %8, %8 : vector<8x32xf32>
    %cst = arith.constant dense<0.000000e+00> : vector<8xf32>
    %10 = vector.multi_reduction <add>, %9, %cst [1] : vector<8x32xf32> to vector<8xf32>
    %11 = vector.shape_cast %10 : vector<8xf32> to vector<8x1xf32>
    %12 = math.rsqrt %11 : vector<8x1xf32>
    %13 = vector.broadcast %12 : vector<8x1xf32> to vector<8x32xf32>
    %14 = arith.mulf %8, %13 : vector<8x32xf32>
    %c0_i32_5 = arith.constant 0 : i32
    %15 = arith.cmpi eq, %arg1, %c0_i32_5 : i32
    %16 = arith.extui %15 : i1 to i32
    %c0_i32_6 = arith.constant 0 : i32
    %17 = arith.cmpi ne, %16, %c0_i32_6 : i32
    scf.if %17 {
      %c0_25 = arith.constant 0 : index
      %c0_26 = arith.constant 0 : index
      %47 = vector.load %arg2[%c0_25, %c0_26] : memref<8x32xf32, #tpu.memory_space<vmem>>, vector<8x32xf32>
      %48 = arith.mulf %47, %47 : vector<8x32xf32>
      %cst_27 = arith.constant dense<0.000000e+00> : vector<8xf32>
      %49 = vector.multi_reduction <add>, %48, %cst_27 [1] : vector<8x32xf32> to vector<8xf32>
      %50 = vector.shape_cast %49 : vector<8xf32> to vector<8x1xf32>
      %51 = math.rsqrt %50 : vector<8x1xf32>
      %52 = vector.broadcast %51 : vector<8x1xf32> to vector<8x32xf32>
      %53 = arith.mulf %47, %52 : vector<8x32xf32>
      %c0_28 = arith.constant 0 : index
      %c0_29 = arith.constant 0 : index
      %54 = vector.load %arg7[%c0_28, %c0_29] : memref<8x32xf32, #tpu.memory_space<vmem>>, vector<8x32xf32>
      tpu.vector_store %arg7[%c0_28, %c0_29], %53 {strides = array<i32>} : memref<8x32xf32, #tpu.memory_space<vmem>>, vector<8x32xf32>,
      %c0_30 = arith.constant 0 : index
      %c0_31 = arith.constant 0 : index
      %55 = vector.load %arg5[%c0_30, %c0_31] : memref<8x32xf32, #tpu.memory_space<vmem>>, vector<8x32xf32>
      %56 = arith.mulf %53, %55 : vector<8x32xf32>
      %cst_32 = arith.constant dense<0.000000e+00> : vector<8xf32>
      %57 = vector.multi_reduction <add>, %56, %cst_32 [1] : vector<8x32xf32> to vector<8xf32>
      %58 = vector.shape_cast %57 : vector<8xf32> to vector<8x1xf32>
      %59 = arith.mulf %55, %55 : vector<8x32xf32>
      %cst_33 = arith.constant dense<0.000000e+00> : vector<8xf32>
      %60 = vector.multi_reduction <add>, %59, %cst_33 [1] : vector<8x32xf32> to vector<8xf32>
      %61 = vector.shape_cast %60 : vector<8xf32> to vector<8x1xf32>
      %62 = math.rsqrt %61 : vector<8x1xf32>
      %63 = arith.mulf %58, %62 : vector<8x1xf32>
      %c0_34 = arith.constant 0 : index
      %c0_35 = arith.constant 0 : index
      %64 = vector.load %arg8[%c0_34, %c0_35] : memref<8x1xf32, #tpu.memory_space<vmem>>, vector<8x1xf32>
      tpu.vector_store %arg8[%c0_34, %c0_35], %63 {strides = array<i32>} : memref<8x1xf32, #tpu.memory_space<vmem>>, vector<8x1xf32>,
    } else {
    }
    %c0_i32_7 = arith.constant 0 : i32
    %18 = arith.cmpi eq, %arg0, %c0_i32_7 : i32
    %19 = arith.extui %18 : i1 to i32
    %c0_i32_8 = arith.constant 0 : i32
    %20 = arith.cmpi ne, %19, %c0_i32_8 : i32
    scf.if %20 {
      %c0_25 = arith.constant 0 : index
      %c0_26 = arith.constant 0 : index
      %47 = vector.load %arg4[%c0_25, %c0_26] : memref<8x32xf32, #tpu.memory_space<vmem>>, vector<8x32xf32>
      %48 = arith.mulf %47, %47 : vector<8x32xf32>
      %cst_27 = arith.constant dense<0.000000e+00> : vector<8xf32>
      %49 = vector.multi_reduction <add>, %48, %cst_27 [1] : vector<8x32xf32> to vector<8xf32>
      %50 = vector.shape_cast %49 : vector<8xf32> to vector<8x1xf32>
      %51 = math.rsqrt %50 : vector<8x1xf32>
      %52 = vector.broadcast %51 : vector<8x1xf32> to vector<8x32xf32>
      %53 = arith.mulf %47, %52 : vector<8x32xf32>
      %54 = arith.mulf %53, %14 : vector<8x32xf32>
      %cst_28 = arith.constant 1.000000e+00 : f32
      %55 = vector.broadcast %cst_28 : f32 to vector<1x32xf32>
      %cst_29 = arith.constant dense<0.000000e+00> : vector<1x8xf32>
      %56 = tpu.matmul %55, %54, %cst_29 {dimension_numbers = #tpu.dot_dimension_numbers<[1], [1], [0], [0], [0, 0, 1, 0], [], []>} : vector<1x32xf32>, vector<8x32xf32>, vector<1x8xf32> -> vector<1x8xf32>
      %57 = arith.index_cast %arg1 : i32 to index
      %c0_30 = arith.constant 0 : index
      %c0_31 = arith.constant 0 : index
      %58 = vector.load %arg9[%57, %c0_30, %c0_31] : memref<1x1x8xf32, #tpu.memory_space<vmem>>, vector<1x1x8xf32>
      %59 = vector.shape_cast %58 : vector<1x1x8xf32> to vector<1x8xf32>
      %60 = vector.shape_cast %56 : vector<1x8xf32> to vector<1x1x8xf32>
      tpu.vector_store %arg9[%57, %c0_30, %c0_31], %60 {strides = array<i32>} : memref<1x1x8xf32, #tpu.memory_space<vmem>>, vector<1x1x8xf32>,
    } else {
    }
    %c0_9 = arith.constant 0 : index
    %c0_10 = arith.constant 0 : index
    %21 = vector.load %arg7[%c0_9, %c0_10] : memref<8x32xf32, #tpu.memory_space<vmem>>, vector<8x32xf32>
    %cst_11 = arith.constant dense<0.000000e+00> : vector<8x8xf32>
    %22 = tpu.matmul %21, %14, %cst_11 {dimension_numbers = #tpu.dot_dimension_numbers<[1], [1], [0], [0], [0, 0, 1, 0], [], []>} : vector<8x32xf32>, vector<8x32xf32>, vector<8x8xf32> -> vector<8x8xf32>
    %cst_12 = arith.constant 1.000000e+00 : f32
    %23 = vector.broadcast %cst_12 : f32 to vector<8x8xf32>
    %24 = arith.addf %22, %23 : vector<8x8xf32>
    %25 = arith.index_cast %arg1 : i32 to index
    %c0_13 = arith.constant 0 : index
    %c0_14 = arith.constant 0 : index
    %26 = vector.load %arg9[%25, %c0_13, %c0_14] : memref<1x1x8xf32, #tpu.memory_space<vmem>>, vector<1x1x8xf32>
    %27 = vector.shape_cast %26 : vector<1x1x8xf32> to vector<1x8xf32>
    %28 = vector.broadcast %27 : vector<1x8xf32> to vector<8x8xf32>
    %29 = arith.subf %24, %28 : vector<8x8xf32>
    %cst_15 = arith.constant 0.000000e+00 : f32
    %30 = vector.broadcast %cst_15 : f32 to vector<8x8xf32>
    %31 = arith.maximumf %30, %29 : vector<8x8xf32>
    %c0_16 = arith.constant 0 : index
    %c0_17 = arith.constant 0 : index
    %32 = vector.load %arg8[%c0_16, %c0_17] : memref<8x1xf32, #tpu.memory_space<vmem>>, vector<8x1xf32>
    %33 = vector.broadcast %32 : vector<8x1xf32> to vector<8x8xf32>
    %34 = arith.subf %24, %33 : vector<8x8xf32>
    %cst_18 = arith.constant 0.000000e+00 : f32
    %35 = vector.broadcast %cst_18 : f32 to vector<8x8xf32>
    %36 = arith.maximumf %35, %34 : vector<8x8xf32>
    %c0_19 = arith.constant 0 : index
    %c0_20 = arith.constant 0 : index
    %37 = memref.load %arg6[%c0_19, %c0_20] : memref<1x1xf32, #tpu.memory_space<smem>>
    %38 = arith.addf %31, %36 : vector<8x8xf32>
    %39 = vector.shape_cast %38 : vector<8x8xf32> to vector<1x8x8xf32>
    %cst_21 = arith.constant dense<0.000000e+00> : vector<1xf32>
    %40 = vector.multi_reduction <add>, %39, %cst_21 [1, 2] : vector<1x8x8xf32> to vector<1xf32>
    %41 = vector.shape_cast %40 : vector<1xf32> to vector<1x1x1xf32>
    %42 = vector.extract %41[0, 0, 0] : f32 from vector<1x1x1xf32>
    %43 = arith.addf %37, %42 : f32
    %c0_22 = arith.constant 0 : index
    %c0_23 = arith.constant 0 : index
    %44 = memref.load %arg6[%c0_22, %c0_23] : memref<1x1xf32, #tpu.memory_space<smem>>
    memref.store %43, %arg6[%c0_22, %c0_23] : memref<1x1xf32, #tpu.memory_space<smem>>
    %45 = arith.extui %5 : i1 to i32
    %c0_i32_24 = arith.constant 0 : i32
    %46 = arith.cmpi ne, %45, %c0_i32_24 : i32
    scf.if %46 {
      %c0_25 = arith.constant 0 : index
      %c0_26 = arith.constant 0 : index
      %47 = memref.load %arg6[%c0_25, %c0_26] : memref<1x1xf32, #tpu.memory_space<smem>>
      %cst_27 = arith.constant 1.600000e+01 : f32
      %48 = arith.subf %47, %cst_27 : f32
      %cst_28 = arith.constant 8.000000e+00 : f32
      %49 = arith.divf %48, %cst_28 : f32
      %c0_29 = arith.constant 0 : index
      %c0_30 = arith.constant 0 : index
      %50 = memref.load %arg6[%c0_29, %c0_30] : memref<1x1xf32, #tpu.memory_space<smem>>
      memref.store %49, %arg6[%c0_29, %c0_30] : memref<1x1xf32, #tpu.memory_space<smem>>
    } else {
    }
    return
  }
  func.func @transform_0(%arg0: i32, %arg1: i32) -> (i32, i32) {
    %c0_i32 = arith.constant 0 : i32
    %c0_i32_0 = arith.constant 0 : i32
    return %arg0, %c0_i32 : i32, i32
  }
  func.func @transform_1(%arg0: i32, %arg1: i32) -> (i32, i32) {
    %c0_i32 = arith.constant 0 : i32
    %c0_i32_0 = arith.constant 0 : i32
    return %arg1, %c0_i32 : i32, i32
  }
  func.func @transform_2(%arg0: i32, %arg1: i32) -> (i32, i32) {
    %c0_i32 = arith.constant 0 : i32
    %0 = arith.cmpi eq, %arg0, %c0_i32 : i32
    %c0_i32_0 = arith.constant 0 : i32
    %1 = arith.select %0, %arg1, %c0_i32_0 : i32
    %c0_i32_1 = arith.constant 0 : i32
    %c0_i32_2 = arith.constant 0 : i32
    return %1, %c0_i32_1 : i32, i32
  }
  func.func @transform_3(%arg0: i32, %arg1: i32) -> (i32, i32) {
    %c0_i32 = arith.constant 0 : i32
    %c0_i32_0 = arith.constant 0 : i32
    return %arg0, %c0_i32 : i32, i32
  }
  func.func @transform_4(%arg0: i32, %arg1: i32) -> (i32, i32) {
    %c0_i32 = arith.constant 0 : i32
    %c0_i32_0 = arith.constant 0 : i32
    %c0_i32_1 = arith.constant 0 : i32
    return %c0_i32, %c0_i32_0 : i32, i32
  }
}

</mosaic_0001>

<bundles_post_ra>
// kernel: tpu_custom_call.1
= control target key start
LH: loop header
LB: loop body
LE: loop exit
PB: predicated region body
PF: predicated region fallthrough
CT: control target
= control target key end

     0   :  { %9 = vsyncpa [#allocation6], 0  ;;  %s533_s0 = inlined_call_operand.hbm [shape: f32[8,32], index: 0, kind: input, shape index: {}]   ;;  %s534_s1 = inlined_call_operand.hbm [shape: f32[8,32], index: 1, kind: input, shape index: {}]   ;;  %s535_s2 = inlined_call_operand.hbm [shape: f32[8,32], index: 2, kind: input, shape index: {}]   ;;  %s536_s3 = inlined_call_operand.hbm [shape: f32[8,32], index: 3, kind: input, shape index: {}]   ;;  %s537_s4 = inlined_call_operand.hbm [shape: f32[1,1], index: 4, kind: output, shape index: {}]  }
   0x1   :  { %10 = vsyncpa [#allocation9], 0 }
   0x2   :  { %11 = vsyncpa [#allocation12], 0 }
   0x3   :  { %12 = vsyncpa [#allocation7], 0  ;;  %s474_s15 = smov [#allocation8]   ;;  %s475_s17 = smov [#allocation5]  }
   0x4   :  { %s29_s16 = sshll.u32 %s474_s15, 4  ;;  %s19_s18 = sshll.u32 %s475_s17, 4  ;;  %s30_s16 = int_to_ptr.vmem [resolvable:$true] %s29_s16  ;;  %s20_s18 = int_to_ptr.vmem [resolvable:$true] %s19_s18 }
   0x5   :  { %s386_s19 = scalar_lea.vmem %s30_s16, 128  ;;  %p391_p1 = scmp.lt.s32.totalorder %s30_s16, %s30_s16 }
   0x6   :  { %p387_p0 = scmp.ne.s32.totalorder %s30_s16, %s386_s19  ;;  %p392_p2 = scmp.lt.s32.totalorder %s386_s19, %s386_s19 }
   0x8   :  { %p393_p3 = por %p392_p2, %p391_p1 }
   0xa   :  { %p394_p4 = pnand %p393_p3, %p387_p0 }
   0xc   :  { %397 = shalt.err (!%p394_p4)
}
   0xd   :  { %32 = dma.hbm_to_vmem [thread:$0]  %s534_s1, 128, %s30_s16, [#allocation9]  }
   0xe   :  { %s406_s22 = scalar_lea.vmem %s20_s18, 128  ;;  %p411_p6 = scmp.lt.s32.totalorder %s20_s18, %s20_s18 }
   0xf   :  { %p407_p5 = scmp.ne.s32.totalorder %s20_s18, %s406_s22  ;;  %p412_p7 = scmp.lt.s32.totalorder %s406_s22, %s406_s22 }
  0x11   :  { %p413_p8 = por %p412_p7, %p411_p6 }
  0x13   :  { %p414_p9 = pnand %p413_p8, %p407_p5 }
  0x15   :  { %417 = shalt.err (!%p414_p9)
}
  0x16   :  { %22 = dma.hbm_to_vmem [thread:$0]  %s533_s0, 128, %s20_s18, [#allocation6]  }
  0x17   :  { %s476_s25 = smov [#allocation10]   ;;  %s477_s27 = smov [#allocation11]  }
  0x18   :  { %s43_s26 = sshll.u32 %s476_s25, 4  ;;  %s53_s28 = sshll.u32 %s477_s27, 4  ;;  %s44_s26 = int_to_ptr.vmem [resolvable:$true] %s43_s26  ;;  %s54_s28 = int_to_ptr.vmem [resolvable:$true] %s53_s28 }
  0x19   :  { %s426_s29 = scalar_lea.vmem %s44_s26, 128  ;;  %p431_p11 = scmp.lt.s32.totalorder %s44_s26, %s44_s26 }
  0x1a   :  { %p427_p10 = scmp.ne.s32.totalorder %s44_s26, %s426_s29  ;;  %p432_p12 = scmp.lt.s32.totalorder %s426_s29, %s426_s29 }
  0x1c   :  { %p433_p13 = por %p432_p12, %p431_p11 }
  0x1e   :  { %p434_p0 = pnand %p433_p13, %p427_p10 }
  0x20   :  { %437 = shalt.err (!%p434_p0)
}
  0x21   :  { %46 = dma.hbm_to_vmem [thread:$0]  %s535_s2, 128, %s44_s26, [#allocation9]  }
  0x22   :  { %s446_s5 = scalar_lea.vmem %s54_s28, 128  ;;  %p451_p2 = scmp.lt.s32.totalorder %s54_s28, %s54_s28 }
  0x23   :  { %p447_p1 = scmp.ne.s32.totalorder %s54_s28, %s446_s5  ;;  %p452_p3 = scmp.lt.s32.totalorder %s446_s5, %s446_s5 }
  0x25   :  { %p453_p4 = por %p452_p3, %p451_p2 }
  0x27   :  { %p454_p5 = pnand %p453_p4, %p447_p1 }
  0x29   :  { %457 = shalt.err (!%p454_p5)
}
  0x2a   :  { %56 = dma.hbm_to_vmem [thread:$0]  %s536_s3, 128, %s54_s28, [#allocation12]  }
  0x2b   :  { %466 = dma.done.wait [#allocation6], 128  }
  0x2c   :  { %467 = vsyncadd [#allocation6], 4294967168 }
  0x2d   :  { %468 = dma.done.wait [#allocation9], 256  }
  0x2e   :  { %469 = vsyncadd [#allocation9], 4294967040 }
  0x2f   :  { %470 = dma.done.wait [#allocation12], 128  }
  0x30   :  { %471 = vsyncadd [#allocation12], 4294967168  ;;  %vm81_vm0 = vcmask 261120   ;;  %v90_v0 = vld [vmem:[#allocation5] sm:$0xff]  ;;  %v79_v1 = vld [vmem:[#allocation8] sm:$0xff]  ;;  %v478_v12 = vmov 0.0  }
  0x31   :  { %v114_v2 = vld [vmem:[#allocation10] sm:$0xff]  ;;  %v91_v3 = vmul.f32 %v90_v0, %v90_v0  ;;  %v80_v4 = vmul.f32 %v79_v1, %v79_v1  ;;  %v98_v9 = vld [vmem:[#allocation11] sm:$0xff]  ;;  %351 = vmatprep.subr.mxu1 %v478_v12  ;;  %346 = vmatprep.subr.mxu0 %v478_v12  ;;  %vm479_vm1 = vmmov 0   ;;  %v480_v26 = vmov 1.0   ;;  %s482_s8 = smov [#allocation13]  }
  0x32   :  { %v115_v5 = vmul.f32 %v114_v2, %v114_v2  ;;  %v103_v10 = vmul.f32 %v98_v9, %v98_v9  ;;  %353 = vmatprep.mubr.msk.f32.mxu1 %vm479_vm1, %v478_v12  ;;  %348 = vmatprep.mubr.msk.f32.mxu0 %vm479_vm1, %v478_v12  ;;  %v481_v27 = vmov 0   ;;  %vm109_vm2 = vcmask 7168  }
  0x33   :  { %v92_v6 = vsel %vm81_vm0, %v91_v3, 0.0  ;;  %v82_v7 = vsel %vm81_vm0, %v80_v4, 0.0  ;;  %368 = vset.pattern.permute.xlu1 %v481_v27  ;;  %369 = vset.pattern.permute.xlu0 %v481_v27  ;;  %vm198_vm3 = vcmask 57344   ;;  %vm296_vm4 = vcmask 64512  }
  0x34   :  { %93 = vadd.xlane.f32.xlu1 %v92_v6  ;;  %83 = vadd.xlane.f32.xlu0 %v82_v7  ;;  %v116_v8 = vsel %vm81_vm0, %v115_v5, 0.0  ;;  %v104_v11 = vsel %vm81_vm0, %v103_v10, 0.0 }
  0x38   :  { %117 = vadd.xlane.f32.xlu0 %v116_v8  ;;  %105 = vadd.xlane.f32.xlu1 %v104_v11 }
  0xbd   :  { %v94_v13 = vpop.xlane.xlu1 %93  ;;  %v84_v14 = vpop.xlane.xlu0 %83 }
  0xbe   :  { %370 = vrsqrt.f32 %v94_v13 }
  0xbf   :  { %372 = vrsqrt.f32 %v84_v14 }
  0xc1   :  { %v118_v15 = vpop.xlane.xlu0 %117  ;;  %v106_v28 = vpop.xlane.xlu1 %105 }
  0xc2   :  { %374 = vrsqrt.f32 %v118_v15 }
  0xc3   :  { %376 = vrsqrt.f32 %v106_v28 }
  0xcb   :  { %v371_v16 = vpop.eup %370 }
  0xcc   :  { %v373_v17 = vpop.eup %372  ;;  %v96_v18 = vmul.f32 %v371_v16, %v90_v0 }
  0xcd   :  { %v86_v19 = vmul.f32 %v373_v17, %v79_v1 }
  0xce   :  { %97 = vst.msk [vmem:[#allocation2] sm:$0xff] %vm81_vm0, %v96_v18  ;;  %v99_v20 = vmul.f32 %v98_v9, %v96_v18 }
  0xcf   :  { %v375_v21 = vpop.eup %374  ;;  %352 = vmatpush3.xpose.msk.msra.mxu1 %vm81_vm0, %v86_v19 }
  0xd0   :  { %v100_v22 = vsel %vm81_vm0, %v99_v20, 0.0  ;;  %v120_v23 = vmul.f32 %v375_v21, %v114_v2  ;;  %v377_v29 = vpop.eup %376 }
  0xd1   :  { %101 = vadd.xlane.f32.xlu0 %v100_v22 }
  0xd2   :  { %v121_v24 = vmul.f32 %v120_v23, %v86_v19 }
  0xd4   :  { %347 = vmatpush3.xpose.msk.msra.mxu0 %vm81_vm0, %v121_v24 }
  0xd5   :  { %v200_v25 = vld [vmem:[#allocation2] sm:$0xff] }
  0xd6   :  { %354 = vmatmul.mubr.msk.f32.vlgmr.msra.gmra.mxu1 %vm81_vm0, %v200_v25 }
  0xd7   :  { %349 = vmatmul.mubr.msk.f32.vlgmr.msra.gmra.mxu0 %vm81_vm0, %v480_v26 }
 0x15a   :  { %v102_v30 = vpop.xlane.xlu0 %101 }
 0x15b   :  { %v108_v31 = vmul.f32 %v377_v29, %v102_v30 }
 0x15d   :  { %110 = vst.msk [vmem:[#allocation3] sm:$0xff] %vm109_vm2, %v108_v31 }
 0x164   :  { %v286_v32 = vld [vmem:[#allocation3] sm:$0xff] }
 0x165   :  { %289 = vperm.xlu1 %368, %v286_v32  }
 0x196   :  { %v273_v33 = vpop.f32.mrf.mxu1 }
 0x197   :  { %v194_v34 = vpop.f32.mrf.mxu0  ;;  %v274_v38 = vadd.f32 1.0, %v273_v33 }
 0x198   :  { %199 = vst.msk [vmem:[#allocation4] sm:$0x1] %vm198_vm3, %v194_v34  ;;  %v355_v35 = vpop.f32.mrf.mxu1 }
 0x199   :  { %v350_v36 = vpop.f32.mrf.mxu0 }
 0x19f   :  { %v340_v37 = vld [vmem:[#allocation4] ss:$0 sm:$0xff] }
 0x1a0   :  { %v284_v39 = vsub.f32 %v274_v38, %v340_v37 }
 0x1a2   :  { %v285_v43 = vmax.f32 %v284_v39, 0.0 }
 0x1e0   :  { %v290_v40 = vpop.permute.xlu1 %289 }
 0x1e1   :  { %v292_v41 = vsub.f32 %v274_v38, %v290_v40 }
 0x1e3   :  { %v293_v42 = vmax.f32 %v292_v41, 0.0 }
 0x1e5   :  { %v295_v44 = vadd.f32 %v293_v42, %v285_v43 }
 0x1e7   :  { %v297_v45 = vsel %vm296_vm4, %v295_v44, 0.0 }
 0x1e8   :  { %298 = vadd.xlane.f32.xlu0 %v297_v45 }
 0x271   :  { %v299_v46 = vpop.xlane.xlu0 %298 }
 0x272   :  { %v300_v47 = vrot.slane %v299_v46, 4 }
 0x274   :  { %v301_v48 = vadd.f32 %v300_v47, %v299_v46 }
 0x276   :  { %v302_v49 = vrot.slane %v301_v48, 2 }
 0x278   :  { %v303_v50 = vadd.f32 %v302_v49, %v301_v48 }
 0x27a   :  { %v304_v51 = vrot.slane %v303_v50, 1 }
 0x27c   :  { %v305_v52 = vadd.f32 %v304_v51, %v303_v50 }
 0x27e   :  { %356 = vpush %v305_v52 }
 0x2af   :  { %s357_s2 = spop %356 }
 0x2b0   :  { %s341_s3 = sadd.f32 -16.0, %s357_s2 }
 0x2b2   :  { %s316_s7 = smul.f32 0.125, %s341_s3 }
 0x2b4   :  { %317 = sst [smem:[#allocation13]] %s316_s7 }
 0x2b5   :  { %325 = dma.smem_to_hbm %s482_s8, 16, %s537_s4, [#allocation7]  }
 0x2b6   :  { %472 = dma.done.wait [#allocation7], 16  }
 0x2b7   :  { %473 = vsyncadd [#allocation7], 4294967280 }
 0x2b8   :  { %329 = sfence }
 0x2b9   :  { %330 = vsyncpa [#allocation6], 1 }
 0x2ba   :  { %331 = vsyncpa [#allocation9], 1 }
 0x2bb   :  { %332 = vsyncpa [#allocation12], 1 }
 0x2bc   :  { %333 = vsyncpa [#allocation7], 1 }

</bundles_post_ra>
